<compile_context>
chip_gen: v7x
topology: tpu7x:2x2x1
jax: 0.10.0
libtpu: 0.0.40
codegen_flags: <defaults>
</compile_context>

<pallas_src>
import functools
import math

import jax
import jax.numpy as jnp
from jax.experimental import pallas as pl
from jax.experimental.pallas import tpu as pltpu

_LANE = 128
_SUB = 8
_CHUNK_ROWS = 512               # rows per in-kernel accumulation sub-chunk
_FAST_PATH_BYTES = 256 * 1024   # below this, a plain fused XLA reduce wins


def _device_defaults():
    """Generation-dependent tiling knobs (block rows, VMEM limit, TC split)."""
    kind = ""
    try:
        dev = jax.devices()[0]
        if dev.platform == "tpu":
            kind = dev.device_kind.lower()
    except Exception:
        pass
    if "v7" in kind:
        # 2 TensorCores, 64 MiB physical VMEM -> big blocks but keep headroom.
        # TODO(synk): profile whether the size-2 "parallel" axis actually lands
        # on both v7x TCs; switch to pltpu.CORE_PARALLEL if it does not.
        return dict(core_splits=2, max_block_rows=8192,
                    vmem_limit=48 * 1024 * 1024)
    if "v6" in kind:
        return dict(core_splits=1, max_block_rows=8192,
                    vmem_limit=48 * 1024 * 1024)
    # v5e / unknown: conservative defaults (single TC, smaller scoped VMEM).
    return dict(core_splits=1, max_block_rows=4096,
                vmem_limit=32 * 1024 * 1024)


def _content_mse_kernel(x_ref, t_ref, partial_ref, *, n_chunks, chunk_rows):
    """Accumulate sum((x - t)^2) of this block into the resident (8,128) slab."""
    i = pl.program_id(1)  # reduction ("arbitrary") axis, innermost

    @pl.when(i == 0)
    def _():
        partial_ref[...] = jnp.zeros_like(partial_ref)

    def _accum(row_start):
        # Cast to f32 BEFORE subtracting (f32-accurate MSE for bf16/fp16).
        xd = x_ref[pl.ds(row_start, chunk_rows), :].astype(jnp.float32)
        td = t_ref[pl.ds(row_start, chunk_rows), :].astype(jnp.float32)
        d = xd - td
        # (chunk_rows,128) -> (chunk_rows//8, 8, 128); axis-0 sum is pure VPU
        # adds (no per-step cross-lane XLU reduce) and keeps temporaries to a
        # few vregs regardless of block_rows.
        partial_ref[...] += jnp.sum((d * d).reshape(-1, _SUB, _LANE), axis=0)

    if n_chunks == 1:
        _accum(0)
    else:
        @pl.loop(0, n_chunks)
        def _(c):
            _accum(pl.multiple_of(c * chunk_rows, chunk_rows))


def _build_plan(shape, dtype, *, min_pallas_bytes, defaults):
    """Static tiling plan for a given input shape/dtype."""
    total = math.prod(shape)
    itemsize = jnp.dtype(dtype).itemsize
    plan = dict(total=total, use_pallas=False)
    # Fast path / non-128-divisible path: fused XLA reduce (already roofline,
    # no repack copy, no pallas_call launch overhead).
    if total == 0 or total * itemsize < min_pallas_bytes or total % _LANE != 0:
        return plan
    rows = total // _LANE
    if rows < _SUB:
        return plan

    max_block_rows = defaults["max_block_rows"]
    if itemsize < 4:
        max_block_rows *= 2          # bf16/fp16: same VMEM bytes per block
    if rows >= _CHUNK_ROWS:
        block_rows = min(max_block_rows, (rows // _CHUNK_ROWS) * _CHUNK_ROWS)
        chunk_rows = _CHUNK_ROWS
    else:
        block_rows = (rows // _SUB) * _SUB
        chunk_rows = block_rows

    core_splits = defaults["core_splits"]
    if rows // (block_rows * core_splits) == 0:
        core_splits = 1              # not enough rows to feed both TCs
    blocks_per_core = rows // (block_rows * core_splits)
    main_rows = blocks_per_core * block_rows * core_splits

    plan.update(
        use_pallas=True,
        rows=rows,
        block_rows=block_rows,
        chunk_rows=chunk_rows,
        n_chunks=block_rows // chunk_rows,
        core_splits=core_splits,
        blocks_per_core=blocks_per_core,
        main_rows=main_rows,
        tail_rows=rows - main_rows,
        vmem_limit=defaults["vmem_limit"],
    )
    return plan


def _pallas_main_sum(x2, t2, plan):
    """sum((x - t)^2) over the block-aligned prefix of the (rows,128) views."""
    block_rows = plan["block_rows"]
    core_splits = plan["core_splits"]
    blocks_per_core = plan["blocks_per_core"]

    def in_map(c, i):
        return (c * blocks_per_core + i, 0)

    kernel = functools.partial(_content_mse_kernel,
                               n_chunks=plan["n_chunks"],
                               chunk_rows=plan["chunk_rows"])
    partials = pl.pallas_call(
        kernel,
        out_shape=jax.ShapeDtypeStruct((core_splits * _SUB, _LANE), jnp.float32),
        grid=(core_splits, blocks_per_core),
        in_specs=[
            pl.BlockSpec((block_rows, _LANE), in_map),
            pl.BlockSpec((block_rows, _LANE), in_map),
        ],
        # One (8,128) partial slab per core slice; resident across the
        # reduction axis (index map ignores i).
        out_specs=pl.BlockSpec((_SUB, _LANE), lambda c, i: (c, 0)),
        compiler_params=pltpu.CompilerParams(
            dimension_semantics=("parallel", "arbitrary"),
            vmem_limit_bytes=plan["vmem_limit"],
        ),
    )(x2, t2)
    # Single cross-lane/sublane reduce, done once outside the kernel.
    return jnp.sum(partials)


class ContentLoss:
    """JAX/Pallas analog of the PyTorch ContentLoss module.

    The (detached) target is prepared once at construction (tiling plan +
    reshaped main view + f32 tail).  __call__ computes mse_loss(input, target)
    into self.loss and returns the input unchanged.
    """

    def __init__(self, target, *, min_pallas_bytes=_FAST_PATH_BYTES,
                 defaults=None):
        target = jax.lax.stop_gradient(target)        # .detach()
        self.target = target
        self._defaults = defaults or _device_defaults()
        self._plan = _build_plan(target.shape, target.dtype,
                                 min_pallas_bytes=min_pallas_bytes,
                                 defaults=self._defaults)
        if self._plan["use_pallas"]:
            rows = self._plan["rows"]
            main_rows = self._plan["main_rows"]
            t2 = target.reshape(rows, _LANE)          # exact reshape: free
            self._t_main = t2
            self._t_tail = (t2[main_rows:].astype(jnp.float32)
                            if self._plan["tail_rows"] else None)
        # mirrors `self.loss = F.mse_loss(target, target)` == 0
        self.loss = jnp.float32(0.0)

    def __call__(self, x):
        assert x.shape == self.target.shape, (x.shape, self.target.shape)
        plan = self._plan

        if not plan["use_pallas"]:
            xf = x.astype(jnp.float32)
            tf = self.target.astype(jnp.float32)
            self.loss = jnp.mean((xf - tf) ** 2)
            return x

        rows, main_rows = plan["rows"], plan["main_rows"]
        x2 = x.reshape(rows, _LANE)                   # exact reshape: free
        total_sum = _pallas_main_sum(x2, self._t_main, plan)
        if plan["tail_rows"]:
            dtail = x2[main_rows:].astype(jnp.float32) - self._t_tail
            total_sum = total_sum + jnp.sum(dtail * dtail)
        self.loss = total_sum / jnp.float32(plan["total"])
        return x                                       # identity pass-through


def content_loss(x, target, *, min_pallas_bytes=_FAST_PATH_BYTES):
    """Functional form: returns (input, mse_loss(input, target))."""
    module = ContentLoss(target, min_pallas_bytes=min_pallas_bytes)
    y = module(x)
    return y, module.loss


if __name__ == "__main__":
    key = jax.random.PRNGKey(0)
    k1, k2, k3, k4, k5, k6 = jax.random.split(key, 6)

    def ref_mse(a, b):
        return jnp.mean((a.astype(jnp.float32) - b.astype(jnp.float32)) ** 2)

    # 1) Small conv-feature map, default threshold -> fast (fused XLA) path.
    x_small = jax.random.normal(k1, (2, 4, 16, 16), dtype=jnp.float32)
    t_small = jax.random.normal(k2, (2, 4, 16, 16), dtype=jnp.float32)
    y1, l1 = content_loss(x_small, t_small)
    jax.block_until_ready((y1, l1))
    assert jnp.allclose(y1, x_small)
    assert jnp.allclose(l1, ref_mse(x_small, t_small), rtol=1e-6, atol=1e-6)

    # 2) Same small shape, Pallas path forced (128-aligned, single block).
    y2, l2 = content_loss(x_small, t_small, min_pallas_bytes=0)
    jax.block_until_ready((y2, l2))
    assert jnp.allclose(y2, x_small)
    assert jnp.allclose(l2, ref_mse(x_small, t_small), rtol=1e-6, atol=1e-6)

    # 3) Medium map whose row count is NOT block-aligned -> Pallas main part
    #    + jnp row-tail (no full-array pad/copy), via the caching class.
    x_med = jax.random.normal(k3, (2, 8, 65, 64), dtype=jnp.float32)
    t_med = jax.random.normal(k4, (2, 8, 65, 64), dtype=jnp.float32)
    cl = ContentLoss(t_med, min_pallas_bytes=0)
    y3 = cl(x_med)
    jax.block_until_ready((y3, cl.loss))
    assert jnp.allclose(y3, x_med)
    assert jnp.allclose(cl.loss, ref_mse(x_med, t_med), rtol=1e-5, atol=1e-6)

    # 4) bf16 inputs: f32-accumulated MSE (cast before subtract).
    x_bf = x_med.astype(jnp.bfloat16)
    t_bf = t_med.astype(jnp.bfloat16)
    y4, l4 = content_loss(x_bf, t_bf, min_pallas_bytes=0)
    jax.block_until_ready((y4, l4))
    assert jnp.allclose(l4, ref_mse(x_bf, t_bf), rtol=1e-5, atol=1e-6)

    # 5) Larger map above the default threshold -> Pallas path with a
    #    multi-chunk in-kernel accumulation loop.
    x_big = jax.random.normal(k5, (2, 8, 128, 128), dtype=jnp.float32)
    t_big = jax.random.normal(k6, (2, 8, 128, 128), dtype=jnp.float32)
    y5, l5 = content_loss(x_big, t_big)
    jax.block_until_ready((y5, l5))
    assert jnp.allclose(y5, x_big)
    assert jnp.allclose(l5, ref_mse(x_big, t_big), rtol=1e-5, atol=1e-6)

    print("KERNEL_OK")
</pallas_src>

<mosaic_0001>
module attributes {stable_mosaic.version = 11 : i64} {
  func.func @_content_mse_kernel(%arg0: i32, %arg1: i32, %arg2: memref<16x128xf32, #tpu.memory_space<vmem>>, %arg3: memref<16x128xf32, #tpu.memory_space<vmem>>, %arg4: memref<8x128xf32, #tpu.memory_space<vmem>>) attributes {dimension_semantics = [#tpu.dimension_semantics<parallel>, #tpu.dimension_semantics<arbitrary>], iteration_bounds = array<i64: 1, 1>, scalar_prefetch = 0 : i64, scratch_operands = 0 : i64, tpu.core_type = #tpu.core_type<tc>, window_params = [{transform_indices = @transform_0, window_bounds = array<i64: 16, 128>}, {transform_indices = @transform_1, window_bounds = array<i64: 16, 128>}, {transform_indices = @transform_2, window_bounds = array<i64: 8, 128>}]} {
    %c0_i32 = arith.constant 0 : i32
    %0 = arith.cmpi eq, %arg1, %c0_i32 : i32
    %1 = arith.extui %0 : i1 to i32
    %c0_i32_0 = arith.constant 0 : i32
    %2 = arith.cmpi ne, %1, %c0_i32_0 : i32
    scf.if %2 {
      %cst_8 = arith.constant 0.000000e+00 : f32
      %12 = vector.broadcast %cst_8 : f32 to vector<8x128xf32>
      %c0_9 = arith.constant 0 : index
      %c0_10 = arith.constant 0 : index
      %13 = vector.load %arg4[%c0_9, %c0_10] : memref<8x128xf32, #tpu.memory_space<vmem>>, vector<8x128xf32>
      tpu.vector_store %arg4[%c0_9, %c0_10], %12 {strides = array<i32>} : memref<8x128xf32, #tpu.memory_space<vmem>>, vector<8x128xf32>,
    } else {
    }
    %c0 = arith.constant 0 : index
    %c0_1 = arith.constant 0 : index
    %3 = vector.load %arg2[%c0, %c0_1] : memref<16x128xf32, #tpu.memory_space<vmem>>, vector<16x128xf32>
    %c0_2 = arith.constant 0 : index
    %c0_3 = arith.constant 0 : index
    %4 = vector.load %arg3[%c0_2, %c0_3] : memref<16x128xf32, #tpu.memory_space<vmem>>, vector<16x128xf32>
    %5 = arith.subf %3, %4 : vector<16x128xf32>
    %c0_4 = arith.constant 0 : index
    %c0_5 = arith.constant 0 : index
    %6 = vector.load %arg4[%c0_4, %c0_5] : memref<8x128xf32, #tpu.memory_space<vmem>>, vector<8x128xf32>
    %7 = arith.mulf %5, %5 : vector<16x128xf32>
    %8 = vector.shape_cast %7 : vector<16x128xf32> to vector<2x8x128xf32>
    %cst = arith.constant dense<0.000000e+00> : vector<8x128xf32>
    %9 = vector.multi_reduction <add>, %8, %cst [0] : vector<2x8x128xf32> to vector<8x128xf32>
    %10 = arith.addf %6, %9 : vector<8x128xf32>
    %c0_6 = arith.constant 0 : index
    %c0_7 = arith.constant 0 : index
    %11 = vector.load %arg4[%c0_6, %c0_7] : memref<8x128xf32, #tpu.memory_space<vmem>>, vector<8x128xf32>
    tpu.vector_store %arg4[%c0_6, %c0_7], %10 {strides = array<i32>} : memref<8x128xf32, #tpu.memory_space<vmem>>, vector<8x128xf32>,
    return
  }
  func.func @transform_0(%arg0: i32, %arg1: i32) -> (i32, i32) {
    %c1_i32 = arith.constant 1 : i32
    %0 = arith.muli %arg0, %c1_i32 : i32
    %1 = arith.addi %0, %arg1 : i32
    %c0_i32 = arith.constant 0 : i32
    %c0_i32_0 = arith.constant 0 : i32
    return %1, %c0_i32 : i32, i32
  }
  func.func @transform_1(%arg0: i32, %arg1: i32) -> (i32, i32) {
    %c1_i32 = arith.constant 1 : i32
    %0 = arith.muli %arg0, %c1_i32 : i32
    %1 = arith.addi %0, %arg1 : i32
    %c0_i32 = arith.constant 0 : i32
    %c0_i32_0 = arith.constant 0 : i32
    return %1, %c0_i32 : i32, i32
  }
  func.func @transform_2(%arg0: i32, %arg1: i32) -> (i32, i32) {
    %c0_i32 = arith.constant 0 : i32
    %c0_i32_0 = arith.constant 0 : i32
    return %arg0, %c0_i32 : i32, i32
  }
}

</mosaic_0001>

<bundles_post_ra>
// kernel: tpu_custom_call.1
= control target key start
LH: loop header
LB: loop body
LE: loop exit
PB: predicated region body
PF: predicated region fallthrough
CT: control target
= control target key end

     0   :  { %7 = vsyncpa [#allocation3], 0  ;;  %s219_s0 = inlined_call_operand.hbm [shape: f32[16,128], index: 0, kind: input, shape index: {}]   ;;  %s220_s1 = inlined_call_operand.hbm [shape: f32[16,128], index: 1, kind: input, shape index: {}]   ;;  %s221_s2 = inlined_call_operand.hbm [shape: f32[8,128], index: 2, kind: output, shape index: {}]  }
   0x1   :  { %8 = vsyncpa [#allocation6], 0 }
   0x2   :  { %9 = vsyncpa [#allocation4], 0  ;;  %s163_s9 = smov [#allocation2]   ;;  %s91_s13 = scalar_lea.hbm %s219_s0, 256 }
   0x3   :  { %s19_s10 = sshll.u32 %s163_s9, 4  ;;  %p92_p0 = scmp.ne.s32.totalorder %s219_s0, %s91_s13  ;;  %s20_s10 = int_to_ptr.vmem [resolvable:$true] %s19_s10 }
   0x4   :  { %p95_p1 = scmp.lt.u32.totalorder %s91_s13, %s219_s0 }
   0x6   :  { %p97_p2 = pnand %p95_p1, %p92_p0 }
   0x8   :  { %100 = shalt.err (!%p97_p2)
}
   0x9   :  { %s101_s18 = scalar_lea.vmem %s20_s10, 256  ;;  %p106_p4 = scmp.lt.s32.totalorder %s20_s10, %s20_s10 }
   0xa   :  { %p102_p3 = scmp.ne.s32.totalorder %s20_s10, %s101_s18  ;;  %p107_p5 = scmp.lt.s32.totalorder %s101_s18, %s101_s18 }
   0xc   :  { %p108_p6 = por %p107_p5, %p106_p4 }
   0xe   :  { %p109_p7 = pnand %p108_p6, %p102_p3 }
  0x10   :  { %112 = shalt.err (!%p109_p7)
}
  0x11   :  { %s164_s19 = smov 128   ;;  %s165_s20 = smov 8  }
  0x12   :  { %25 = dma.hbm_to_vmem [thread:$0]  %s219_s0, 256, %s20_s10, [#allocation3], %s164_s19, %s164_s19, %s165_s20  }
  0x13   :  { %s166_s23 = smov [#allocation5]   ;;  %s113_s27 = scalar_lea.hbm %s220_s1, 256 }
  0x14   :  { %s35_s24 = sshll.u32 %s166_s23, 4  ;;  %p114_p8 = scmp.ne.s32.totalorder %s220_s1, %s113_s27  ;;  %s36_s24 = int_to_ptr.vmem [resolvable:$true] %s35_s24 }
  0x15   :  { %p117_p9 = scmp.lt.u32.totalorder %s113_s27, %s220_s1 }
  0x17   :  { %p119_p10 = pnand %p117_p9, %p114_p8 }
  0x19   :  { %122 = shalt.err (!%p119_p10)
}
  0x1a   :  { %s123_s4 = scalar_lea.vmem %s36_s24, 256  ;;  %p128_p12 = scmp.lt.s32.totalorder %s36_s24, %s36_s24 }
  0x1b   :  { %p124_p11 = scmp.ne.s32.totalorder %s36_s24, %s123_s4  ;;  %p129_p13 = scmp.lt.s32.totalorder %s123_s4, %s123_s4 }
  0x1d   :  { %p130_p0 = por %p129_p13, %p128_p12 }
  0x1f   :  { %p131_p1 = pnand %p130_p0, %p124_p11 }
  0x21   :  { %134 = shalt.err (!%p131_p1)
}
  0x22   :  { %41 = dma.hbm_to_vmem [thread:$0]  %s220_s1, 256, %s36_s24, [#allocation6], %s164_s19, %s164_s19, %s165_s20  }
  0x23   :  { %157 = dma.done.wait [#allocation3], 256  }
  0x24   :  { %158 = vsyncadd [#allocation3], 4294967040 }
  0x25   :  { %159 = dma.done.wait [#allocation6], 256  }
  0x26   :  { %160 = vsyncadd [#allocation6], 4294967040  ;;  %v57_v0 = vld [vmem:[#allocation2] sm:$0xff]  ;;  %v58_v1 = vld [vmem:[#allocation2 + $0x8] sm:$0xff]  ;;  %s167_s6 = smov [#allocation7]  }
  0x27   :  { %v59_v2 = vld [vmem:[#allocation5] sm:$0xff]  ;;  %v60_v3 = vld [vmem:[#allocation5 + $0x8] sm:$0xff]  ;;  %s75_s7 = sshll.u32 %s167_s6, 4  ;;  %s76_s7 = int_to_ptr.vmem [resolvable:$true] %s75_s7 }
  0x28   :  { %v61_v4 = vsub.f32 %v57_v0, %v59_v2  ;;  %v62_v5 = vsub.f32 %v58_v1, %v60_v3  ;;  %s135_s8 = scalar_lea.vmem %s76_s7, 128  ;;  %p140_p3 = scmp.lt.s32.totalorder %s76_s7, %s76_s7 }
  0x29   :  { %p136_p2 = scmp.ne.s32.totalorder %s76_s7, %s135_s8  ;;  %p141_p4 = scmp.lt.s32.totalorder %s135_s8, %s135_s8 }
  0x2a   :  { %v64_v6 = vmul.f32 %v61_v4, %v61_v4  ;;  %v65_v7 = vmul.f32 %v62_v5, %v62_v5 }
  0x2b   :  { %p142_p5 = por %p141_p4, %p140_p3 }
  0x2c   :  { %v66_v8 = vadd.f32 %v65_v7, %v64_v6 }
  0x2d   :  { %p143_p6 = pnand %p142_p5, %p136_p2 }
  0x2e   :  { %68 = vst [vmem:[#allocation7] sm:$0xff] %v66_v8 }
  0x2f   :  { %146 = shalt.err (!%p143_p6)
}
  0x30   :  { %s147_s10 = scalar_lea.hbm %s221_s2, 128 }
  0x31   :  { %p148_p7 = scmp.ne.s32.totalorder %s221_s2, %s147_s10  ;;  %p151_p8 = scmp.lt.u32.totalorder %s147_s10, %s221_s2 }
  0x33   :  { %p153_p9 = pnand %p151_p8, %p148_p7 }
  0x35   :  { %156 = shalt.err (!%p153_p9)
}
  0x36   :  { %78 = dma.vmem_to_hbm [thread:$0]  %s76_s7, 128, %s221_s2, [#allocation4]  }
  0x37   :  { %161 = dma.done.wait [#allocation4], 128  }
  0x38   :  { %162 = vsyncadd [#allocation4], 4294967168 }
  0x39   :  { %82 = vsyncpa [#allocation3], 1 }
  0x3a   :  { %83 = vsyncpa [#allocation6], 1 }
  0x3b   :  { %84 = vsyncpa [#allocation4], 1 }

</bundles_post_ra>
